<compile_context>
chip_gen: v7x
topology: tpu7x:2x2x1
jax: 0.10.0
libtpu: 0.0.40
codegen_flags: <defaults>
</compile_context>

<pallas_src>
from functools import partial

import jax
import jax.numpy as jnp
from jax.experimental import pallas as pl
from jax.experimental.pallas import tpu as pltpu


def _decoder_kernel(x_ref, w1_ref, w2_ref, bias_ref, emb_ref,
                    slab_ref, sample_ref, xout_ref):
    K, N, _ = emb_ref.shape
    B = x_ref.shape[0]

    x = x_ref[...]                                            # (B, C) f32 carry

    # loop-invariant iotas (hoisted; JAX does not CSE broadcast_in_dim)
    col = jax.lax.broadcasted_iota(jnp.int32, (B, N), 1)      # class index
    kcol = jax.lax.broadcasted_iota(jnp.int32, (B, K), 1)     # sub-decoder idx

    sample_slab = jnp.zeros((B, K), jnp.int32)
    logp_slab = jnp.zeros((B, K), jnp.float32)
    ent_slab = jnp.zeros((B, K), jnp.float32)

    for k in range(K):   # static unroll; K is small and the chain is serial
        b1 = bias_ref[k, 0:1, :]                              # (1, C)
        b2 = bias_ref[k, 1:2, :N]                             # (1, N)

        # --- MLP: Linear(C,C) -> ReLU -> Linear(C,N) ----------------------
        h = jnp.maximum(
            jnp.dot(x, w1_ref[k], preferred_element_type=jnp.float32) + b1, 0.0)
        logits = (jnp.dot(h, w2_ref[k], preferred_element_type=jnp.float32)
                  + b2)                                       # (B, N)

        # --- deterministic sample: first argmax index ----------------------
        m = jnp.max(logits, axis=-1, keepdims=True)           # (B, 1)
        samp = jnp.min(jnp.where(logits == m, col, N),
                       axis=-1, keepdims=True).astype(jnp.int32)

        # --- softmax stats --------------------------------------------------
        expv = jnp.exp(logits - m)
        sumexp = jnp.sum(expv, axis=-1, keepdims=True)         # (B, 1)
        logsum = jnp.log(sumexp)
        lse = m + logsum
        # logits[sample] == m exactly  =>  log_prob = m - lse = -log(sumexp)
        logp = -logsum
        # entropy = lse - E[logits]  (exact division; EUP not the bottleneck)
        ent = lse - jnp.sum(expv * logits, axis=-1, keepdims=True) / sumexp

        # --- residual: embedding table is already LayerNorm'ed + affine ----
        onehot = (col == samp).astype(jnp.float32)             # (B, N)
        x = x + jnp.dot(onehot, emb_ref[k], preferred_element_type=jnp.float32)

        # --- lane-dense packing ---------------------------------------------
        slab_ref[:, k * N:(k + 1) * N] = logits                # static lane slice
        in_k = kcol == k
        sample_slab = jnp.where(in_k, samp, sample_slab)
        logp_slab = jnp.where(in_k, logp, logp_slab)
        ent_slab = jnp.where(in_k, ent, ent_slab)

    # trailing lanes of the f32 slab: [K*N, K*N+K)=log_prob, [K*N+K, K*N+2K)=entropy
    slab_ref[:, K * N:K * N + K] = logp_slab
    slab_ref[:, K * N + K:K * N + 2 * K] = ent_slab
    sample_ref[...] = sample_slab
    xout_ref[...] = x


@partial(jax.jit, static_argnames=("block_b",))
def multidiscrete_auto_decoder(x, w1, w2, bias, emb_ln, *, block_b=None):
    """x:(B,C) f32; w1:(K,C,C); w2:(K,C,N); bias:(K,2,C); emb_ln:(K,N,C)."""
    B, C = x.shape
    K, N, _ = emb_ln.shape
    S = K * N + 2 * K                       # f32 output slab lane width

    if block_b is None:
        block_b = B
    assert B % block_b == 0 and block_b % 8 == 0
    grid = (B // block_b,)

    in_specs = [
        pl.BlockSpec((block_b, C), lambda i: (i, 0)),          # x (tiled over B)
        pl.BlockSpec((K, C, C), lambda i: (0, 0, 0)),          # w1 (resident)
        pl.BlockSpec((K, C, N), lambda i: (0, 0, 0)),          # w2
        pl.BlockSpec((K, 2, C), lambda i: (0, 0, 0)),          # packed biases
        pl.BlockSpec((K, N, C), lambda i: (0, 0, 0)),          # pre-normed emb
    ]
    out_specs = [
        pl.BlockSpec((block_b, S), lambda i: (i, 0)),          # logits|logp|ent
        pl.BlockSpec((block_b, K), lambda i: (i, 0)),          # sample (int32)
        pl.BlockSpec((block_b, C), lambda i: (i, 0)),          # updated x
    ]

    slab, sample, x_out = pl.pallas_call(
        _decoder_kernel,
        out_shape=(
            jax.ShapeDtypeStruct((B, S), jnp.float32),
            jax.ShapeDtypeStruct((B, K), jnp.int32),
            jax.ShapeDtypeStruct((B, C), jnp.float32),
        ),
        grid=grid,
        in_specs=in_specs,
        out_specs=out_specs,
        input_output_aliases={0: 2},      # donate x's buffer to x_out
        compiler_params=pltpu.CompilerParams(
            dimension_semantics=("parallel",)),               # megacore on v7x
    )(x, w1, w2, bias, emb_ln)

    out = {
        "logits": slab[:, :K * N].reshape(B, K, N),
        "sample": sample,                                     # (B, K)
        "log_prob": slab[:, K * N:K * N + K],                 # (B, K)
        "entropy": slab[:, K * N + K:],                       # (B, K)
        # TODO(synk): out['distribution'] (list of torch Categorical objects)
        # has no array equivalent; logits/log_prob/entropy carry the info.
    }
    return out, x_out


def init_params(key, K, C, N):
    """Deterministic raw-parameter init mirroring the module's __init__."""
    ks = jax.random.split(key, 5)
    scale1 = 1.0 / jnp.sqrt(jnp.float32(C))
    w1 = jax.random.uniform(ks[0], (K, C, C), jnp.float32, -scale1, scale1)
    b1 = jax.random.uniform(ks[1], (K, 1, C), jnp.float32, -scale1, scale1)
    w2 = jax.random.uniform(ks[2], (K, C, N), jnp.float32, -scale1, scale1)
    b2 = jax.random.uniform(ks[3], (K, 1, N), jnp.float32, -scale1, scale1)
    emb = jax.random.normal(ks[4], (K, N, C), jnp.float32)   # nn.Embedding ~ N(0,1)
    ln_g = jnp.ones((K, 1, C), jnp.float32)                  # nn.LayerNorm defaults
    ln_b = jnp.zeros((K, 1, C), jnp.float32)
    return w1, b1, w2, b2, emb, ln_g, ln_b


def prepare_params(w1, b1, w2, b2, emb, ln_g, ln_b):
    """One-time parameter folding done outside the kernel (at init)."""
    K, C, _ = w1.shape
    N = w2.shape[-1]
    # LayerNorm(Embedding(sample)) depends only on the embedding row -> fold it.
    mu = jnp.mean(emb, axis=-1, keepdims=True)
    var = jnp.mean((emb - mu) ** 2, axis=-1, keepdims=True)
    emb_ln = (emb - mu) * jax.lax.rsqrt(var + 1e-5) * ln_g + ln_b   # (K, N, C)
    # Coalesce tiny bias vectors into one array: row 0 = b1, row 1 = b2 (padded).
    bias = jnp.zeros((K, 2, C), jnp.float32)
    bias = bias.at[:, 0, :].set(b1[:, 0, :])
    bias = bias.at[:, 1, :N].set(b2[:, 0, :])
    return w1, w2, bias, emb_ln


def _reference(x, w1, b1, w2, b2, emb, ln_g, ln_b):
    """Pure-JAX reference of the same forward pass (high-precision dots)."""
    K = w1.shape[0]
    hp = jax.lax.Precision.HIGHEST
    logits_l, samp_l, logp_l, ent_l = [], [], [], []
    for k in range(K):
        h = jnp.maximum(jnp.dot(x, w1[k], precision=hp) + b1[k], 0.0)
        logits = jnp.dot(h, w2[k], precision=hp) + b2[k]
        samp = jnp.argmax(logits, axis=-1)
        logz = jax.nn.logsumexp(logits, axis=-1)
        sel = jnp.take_along_axis(logits, samp[:, None], axis=-1)[:, 0]
        logp = sel - logz
        p = jax.nn.softmax(logits, axis=-1)
        ent = logz - jnp.sum(p * logits, axis=-1)
        e = emb[k][samp]
        mu = jnp.mean(e, axis=-1, keepdims=True)
        var = jnp.mean((e - mu) ** 2, axis=-1, keepdims=True)
        x = x + (e - mu) / jnp.sqrt(var + 1e-5) * ln_g[k] + ln_b[k]
        logits_l.append(logits)
        samp_l.append(samp.astype(jnp.int32))
        logp_l.append(logp)
        ent_l.append(ent)
    out = {
        "logits": jnp.stack(logits_l, axis=1),
        "sample": jnp.stack(samp_l, axis=1),
        "log_prob": jnp.stack(logp_l, axis=1),
        "entropy": jnp.stack(ent_l, axis=1),
    }
    return out, x


def _check(out, x_new, ref_out, ref_x, B, K, N, C):
    assert out["logits"].shape == (B, K, N)
    assert out["sample"].shape == (B, K)
    assert out["log_prob"].shape == (B, K)
    assert out["entropy"].shape == (B, K)
    assert x_new.shape == (B, C)
    assert bool(jnp.all(jnp.isfinite(out["logits"])))
    assert bool(jnp.all(jnp.isfinite(x_new)))
    # self-consistency: sample == argmax of the kernel's own logits
    assert bool(jnp.array_equal(
        out["sample"], jnp.argmax(out["logits"], axis=-1).astype(jnp.int32)))
    # numerical check vs. pure-JAX reference
    assert bool(jnp.allclose(out["logits"], ref_out["logits"], atol=1e-2, rtol=1e-2))
    assert bool(jnp.allclose(out["log_prob"], ref_out["log_prob"], atol=1e-2, rtol=1e-2))
    assert bool(jnp.allclose(out["entropy"], ref_out["entropy"], atol=1e-2, rtol=1e-2))
    assert bool(jnp.allclose(x_new, ref_x, atol=1e-2, rtol=1e-2))


if __name__ == "__main__":
    # config.channels = 32, config.decoder_layers = 2, nonlinearity = ReLU
    # space = MultiDiscrete([16, 16, 16, 16])  -> K=4 sub-decoders, N=16 each
    B, C, K, N = 8, 32, 4, 16

    key = jax.random.PRNGKey(0)
    k_x, k_p = jax.random.split(key)
    x = jax.random.normal(k_x, (B, C), jnp.float32)
    raw = init_params(k_p, K, C, N)
    kparams = prepare_params(*raw)          # fold LN into emb, pack biases

    # --- small batch, single block (default path) ---------------------------
    out, x_new = multidiscrete_auto_decoder(x, *kparams)
    jax.block_until_ready((out, x_new))
    ref_out, ref_x = _reference(x, *raw)
    _check(out, x_new, ref_out, ref_x, B, K, N, C)

    # --- larger batch through the B-tiled grid path (shards across TCs) -----
    B2 = 32
    x2 = jax.random.normal(jax.random.PRNGKey(1), (B2, C), jnp.float32)
    out2, x2_new = multidiscrete_auto_decoder(x2, *kparams, block_b=16)
    jax.block_until_ready((out2, x2_new))
    ref_out2, ref_x2 = _reference(x2, *raw)
    _check(out2, x2_new, ref_out2, ref_x2, B2, K, N, C)

    print("KERNEL_OK")
</pallas_src>

<mosaic_0001>
module attributes {stable_mosaic.version = 11 : i64} {
  func.func @_decoder_kernel(%arg0: i32, %arg1: memref<8x32xf32, #tpu.memory_space<vmem>>, %arg2: memref<4x32x32xf32, #tpu.memory_space<vmem>>, %arg3: memref<4x32x16xf32, #tpu.memory_space<vmem>>, %arg4: memref<4x2x32xf32, #tpu.memory_space<vmem>>, %arg5: memref<4x16x32xf32, #tpu.memory_space<vmem>>, %arg6: memref<8x72xf32, #tpu.memory_space<vmem>>, %arg7: memref<8x4xi32, #tpu.memory_space<vmem>>, %arg8: memref<8x32xf32, #tpu.memory_space<vmem>>) attributes {dimension_semantics = [#tpu.dimension_semantics<parallel>], iteration_bounds = array<i64: 1>, scalar_prefetch = 0 : i64, scratch_operands = 0 : i64, tpu.core_type = #tpu.core_type<tc>, window_params = [{transform_indices = @transform_0, window_bounds = array<i64: 8, 32>}, {pipeline_mode = #tpu.pipeline_mode<synchronous>, transform_indices = @transform_1, window_bounds = array<i64: 4, 32, 32>}, {pipeline_mode = #tpu.pipeline_mode<synchronous>, transform_indices = @transform_2, window_bounds = array<i64: 4, 32, 16>}, {pipeline_mode = #tpu.pipeline_mode<synchronous>, transform_indices = @transform_3, window_bounds = array<i64: 4, 2, 32>}, {pipeline_mode = #tpu.pipeline_mode<synchronous>, transform_indices = @transform_4, window_bounds = array<i64: 4, 16, 32>}, {transform_indices = @transform_5, window_bounds = array<i64: 8, 72>}, {transform_indices = @transform_6, window_bounds = array<i64: 8, 4>}, {transform_indices = @transform_7, window_bounds = array<i64: 8, 32>}]} {
    %c0 = arith.constant 0 : index
    %c0_0 = arith.constant 0 : index
    %0 = vector.load %arg1[%c0, %c0_0] : memref<8x32xf32, #tpu.memory_space<vmem>>, vector<8x32xf32>
    %1 = tpu.iota {dimensions = array<i32: 1>} : vector<8x16xi32>
    %2 = tpu.iota {dimensions = array<i32: 1>} : vector<8x4xi32>
    %c0_i32 = arith.constant 0 : i32
    %3 = vector.broadcast %c0_i32 : i32 to vector<8x4xi32>
    %cst = arith.constant 0.000000e+00 : f32
    %4 = vector.broadcast %cst : f32 to vector<8x4xf32>
    %cst_1 = arith.constant 0.000000e+00 : f32
    %5 = vector.broadcast %cst_1 : f32 to vector<8x4xf32>
    %c0_2 = arith.constant 0 : index
    %c0_3 = arith.constant 0 : index
    %c0_4 = arith.constant 0 : index
    %6 = vector.load %arg4[%c0_2, %c0_3, %c0_4] : memref<4x2x32xf32, #tpu.memory_space<vmem>>, vector<1x1x32xf32>
    %7 = vector.shape_cast %6 : vector<1x1x32xf32> to vector<1x32xf32>
    %c0_5 = arith.constant 0 : index
    %c1 = arith.constant 1 : index
    %c0_6 = arith.constant 0 : index
    %8 = vector.load %arg4[%c0_5, %c1, %c0_6] : memref<4x2x32xf32, #tpu.memory_space<vmem>>, vector<1x1x16xf32>
    %9 = vector.shape_cast %8 : vector<1x1x16xf32> to vector<1x16xf32>
    %c0_7 = arith.constant 0 : index
    %c0_8 = arith.constant 0 : index
    %c0_9 = arith.constant 0 : index
    %10 = vector.load %arg2[%c0_7, %c0_8, %c0_9] : memref<4x32x32xf32, #tpu.memory_space<vmem>>, vector<1x32x32xf32>
    %11 = vector.shape_cast %10 : vector<1x32x32xf32> to vector<32x32xf32>
    %cst_10 = arith.constant dense<0.000000e+00> : vector<8x32xf32>
    %12 = tpu.matmul %0, %11, %cst_10 {dimension_numbers = #tpu.dot_dimension_numbers<[1], [0], [0], [1], [0, 0, 1, 1], [], []>} : vector<8x32xf32>, vector<32x32xf32>, vector<8x32xf32> -> vector<8x32xf32>
    %13 = vector.broadcast %7 : vector<1x32xf32> to vector<8x32xf32>
    %14 = arith.addf %12, %13 : vector<8x32xf32>
    %cst_11 = arith.constant 0.000000e+00 : f32
    %15 = vector.broadcast %cst_11 : f32 to vector<8x32xf32>
    %16 = arith.maximumf %14, %15 : vector<8x32xf32>
    %c0_12 = arith.constant 0 : index
    %c0_13 = arith.constant 0 : index
    %c0_14 = arith.constant 0 : index
    %17 = vector.load %arg3[%c0_12, %c0_13, %c0_14] : memref<4x32x16xf32, #tpu.memory_space<vmem>>, vector<1x32x16xf32>
    %18 = vector.shape_cast %17 : vector<1x32x16xf32> to vector<32x16xf32>
    %cst_15 = arith.constant dense<0.000000e+00> : vector<8x16xf32>
    %19 = tpu.matmul %16, %18, %cst_15 {dimension_numbers = #tpu.dot_dimension_numbers<[1], [0], [0], [1], [0, 0, 1, 1], [], []>} : vector<8x32xf32>, vector<32x16xf32>, vector<8x16xf32> -> vector<8x16xf32>
    %20 = vector.broadcast %9 : vector<1x16xf32> to vector<8x16xf32>
    %21 = arith.addf %19, %20 : vector<8x16xf32>
    %cst_16 = arith.constant dense<0xFF800000> : vector<8xf32>
    %22 = vector.multi_reduction <maximumf>, %21, %cst_16 [1] : vector<8x16xf32> to vector<8xf32>
    %23 = vector.shape_cast %22 : vector<8xf32> to vector<8x1xf32>
    %24 = vector.broadcast %23 : vector<8x1xf32> to vector<8x16xf32>
    %25 = arith.cmpf oeq, %21, %24 : vector<8x16xf32>
    %c16_i32 = arith.constant 16 : i32
    %26 = vector.broadcast %c16_i32 : i32 to vector<8x16xi32>
    %27 = arith.select %25, %1, %26 : vector<8x16xi1>, vector<8x16xi32>
    %cst_17 = arith.constant dense<2147483647> : vector<8xi32>
    %28 = vector.multi_reduction <minsi>, %27, %cst_17 [1] : vector<8x16xi32> to vector<8xi32>
    %29 = vector.shape_cast %28 : vector<8xi32> to vector<8x1xi32>
    %30 = vector.broadcast %23 : vector<8x1xf32> to vector<8x16xf32>
    %31 = arith.subf %21, %30 : vector<8x16xf32>
    %32 = math.exp %31 : vector<8x16xf32>
    %cst_18 = arith.constant dense<0.000000e+00> : vector<8xf32>
    %33 = vector.multi_reduction <add>, %32, %cst_18 [1] : vector<8x16xf32> to vector<8xf32>
    %34 = vector.shape_cast %33 : vector<8xf32> to vector<8x1xf32>
    %35 = math.log %34 : vector<8x1xf32>
    %36 = arith.addf %23, %35 : vector<8x1xf32>
    %cst_19 = arith.constant 0.000000e+00 : f32
    %37 = vector.broadcast %cst_19 : f32 to vector<8x1xf32>
    %38 = arith.subf %37, %35 : vector<8x1xf32>
    %39 = arith.mulf %32, %21 : vector<8x16xf32>
    %cst_20 = arith.constant dense<0.000000e+00> : vector<8xf32>
    %40 = vector.multi_reduction <add>, %39, %cst_20 [1] : vector<8x16xf32> to vector<8xf32>
    %41 = vector.shape_cast %40 : vector<8xf32> to vector<8x1xf32>
    %42 = arith.divf %41, %34 : vector<8x1xf32>
    %43 = arith.subf %36, %42 : vector<8x1xf32>
    %44 = vector.broadcast %29 : vector<8x1xi32> to vector<8x16xi32>
    %45 = arith.cmpi eq, %1, %44 : vector<8x16xi32>
    %46 = arith.extui %45 : vector<8x16xi1> to vector<8x16xi32>
    %47 = arith.sitofp %46 : vector<8x16xi32> to vector<8x16xf32>
    %c0_21 = arith.constant 0 : index
    %c0_22 = arith.constant 0 : index
    %c0_23 = arith.constant 0 : index
    %48 = vector.load %arg5[%c0_21, %c0_22, %c0_23] : memref<4x16x32xf32, #tpu.memory_space<vmem>>, vector<1x16x32xf32>
    %49 = vector.shape_cast %48 : vector<1x16x32xf32> to vector<16x32xf32>
    %cst_24 = arith.constant dense<0.000000e+00> : vector<8x32xf32>
    %50 = tpu.matmul %47, %49, %cst_24 {dimension_numbers = #tpu.dot_dimension_numbers<[1], [0], [0], [1], [0, 0, 1, 1], [], []>} : vector<8x16xf32>, vector<16x32xf32>, vector<8x32xf32> -> vector<8x32xf32>
    %51 = arith.addf %0, %50 : vector<8x32xf32>
    %c0_25 = arith.constant 0 : index
    %c0_26 = arith.constant 0 : index
    %52 = vector.load %arg6[%c0_25, %c0_26] : memref<8x72xf32, #tpu.memory_space<vmem>>, vector<8x16xf32>
    tpu.vector_store %arg6[%c0_25, %c0_26], %21 {strides = array<i32>} : memref<8x72xf32, #tpu.memory_space<vmem>>, vector<8x16xf32>,
    %c0_i32_27 = arith.constant 0 : i32
    %53 = vector.broadcast %c0_i32_27 : i32 to vector<8x4xi32>
    %54 = arith.cmpi eq, %2, %53 : vector<8x4xi32>
    %55 = vector.shape_cast %29 : vector<8x1xi32> to vector<8x1xi32>
    %56 = vector.broadcast %55 : vector<8x1xi32> to vector<8x4xi32>
    %57 = arith.select %54, %56, %3 : vector<8x4xi1>, vector<8x4xi32>
    %58 = vector.shape_cast %38 : vector<8x1xf32> to vector<8x1xf32>
    %59 = vector.broadcast %58 : vector<8x1xf32> to vector<8x4xf32>
    %60 = arith.select %54, %59, %4 : vector<8x4xi1>, vector<8x4xf32>
    %61 = vector.shape_cast %43 : vector<8x1xf32> to vector<8x1xf32>
    %62 = vector.broadcast %61 : vector<8x1xf32> to vector<8x4xf32>
    %63 = arith.select %54, %62, %5 : vector<8x4xi1>, vector<8x4xf32>
    %c1_28 = arith.constant 1 : index
    %c0_29 = arith.constant 0 : index
    %c0_30 = arith.constant 0 : index
    %64 = vector.load %arg4[%c1_28, %c0_29, %c0_30] : memref<4x2x32xf32, #tpu.memory_space<vmem>>, vector<1x1x32xf32>
    %65 = vector.shape_cast %64 : vector<1x1x32xf32> to vector<1x32xf32>
    %c1_31 = arith.constant 1 : index
    %c1_32 = arith.constant 1 : index
    %c0_33 = arith.constant 0 : index
    %66 = vector.load %arg4[%c1_31, %c1_32, %c0_33] : memref<4x2x32xf32, #tpu.memory_space<vmem>>, vector<1x1x16xf32>
    %67 = vector.shape_cast %66 : vector<1x1x16xf32> to vector<1x16xf32>
    %c1_34 = arith.constant 1 : index
    %c0_35 = arith.constant 0 : index
    %c0_36 = arith.constant 0 : index
    %68 = vector.load %arg2[%c1_34, %c0_35, %c0_36] : memref<4x32x32xf32, #tpu.memory_space<vmem>>, vector<1x32x32xf32>
    %69 = vector.shape_cast %68 : vector<1x32x32xf32> to vector<32x32xf32>
    %cst_37 = arith.constant dense<0.000000e+00> : vector<8x32xf32>
    %70 = tpu.matmul %51, %69, %cst_37 {dimension_numbers = #tpu.dot_dimension_numbers<[1], [0], [0], [1], [0, 0, 1, 1], [], []>} : vector<8x32xf32>, vector<32x32xf32>, vector<8x32xf32> -> vector<8x32xf32>
    %71 = vector.broadcast %65 : vector<1x32xf32> to vector<8x32xf32>
    %72 = arith.addf %70, %71 : vector<8x32xf32>
    %cst_38 = arith.constant 0.000000e+00 : f32
    %73 = vector.broadcast %cst_38 : f32 to vector<8x32xf32>
    %74 = arith.maximumf %72, %73 : vector<8x32xf32>
    %c1_39 = arith.constant 1 : index
    %c0_40 = arith.constant 0 : index
    %c0_41 = arith.constant 0 : index
    %75 = vector.load %arg3[%c1_39, %c0_40, %c0_41] : memref<4x32x16xf32, #tpu.memory_space<vmem>>, vector<1x32x16xf32>
    %76 = vector.shape_cast %75 : vector<1x32x16xf32> to vector<32x16xf32>
    %cst_42 = arith.constant dense<0.000000e+00> : vector<8x16xf32>
    %77 = tpu.matmul %74, %76, %cst_42 {dimension_numbers = #tpu.dot_dimension_numbers<[1], [0], [0], [1], [0, 0, 1, 1], [], []>} : vector<8x32xf32>, vector<32x16xf32>, vector<8x16xf32> -> vector<8x16xf32>
    %78 = vector.broadcast %67 : vector<1x16xf32> to vector<8x16xf32>
    %79 = arith.addf %77, %78 : vector<8x16xf32>
    %cst_43 = arith.constant dense<0xFF800000> : vector<8xf32>
    %80 = vector.multi_reduction <maximumf>, %79, %cst_43 [1] : vector<8x16xf32> to vector<8xf32>
    %81 = vector.shape_cast %80 : vector<8xf32> to vector<8x1xf32>
    %82 = vector.broadcast %81 : vector<8x1xf32> to vector<8x16xf32>
    %83 = arith.cmpf oeq, %79, %82 : vector<8x16xf32>
    %c16_i32_44 = arith.constant 16 : i32
    %84 = vector.broadcast %c16_i32_44 : i32 to vector<8x16xi32>
    %85 = arith.select %83, %1, %84 : vector<8x16xi1>, vector<8x16xi32>
    %cst_45 = arith.constant dense<2147483647> : vector<8xi32>
    %86 = vector.multi_reduction <minsi>, %85, %cst_45 [1] : vector<8x16xi32> to vector<8xi32>
    %87 = vector.shape_cast %86 : vector<8xi32> to vector<8x1xi32>
    %88 = vector.broadcast %81 : vector<8x1xf32> to vector<8x16xf32>
    %89 = arith.subf %79, %88 : vector<8x16xf32>
    %90 = math.exp %89 : vector<8x16xf32>
    %cst_46 = arith.constant dense<0.000000e+00> : vector<8xf32>
    %91 = vector.multi_reduction <add>, %90, %cst_46 [1] : vector<8x16xf32> to vector<8xf32>
    %92 = vector.shape_cast %91 : vector<8xf32> to vector<8x1xf32>
    %93 = math.log %92 : vector<8x1xf32>
    %94 = arith.addf %81, %93 : vector<8x1xf32>
    %cst_47 = arith.constant 0.000000e+00 : f32
    %95 = vector.broadcast %cst_47 : f32 to vector<8x1xf32>
    %96 = arith.subf %95, %93 : vector<8x1xf32>
    %97 = arith.mulf %90, %79 : vector<8x16xf32>
    %cst_48 = arith.constant dense<0.000000e+00> : vector<8xf32>
    %98 = vector.multi_reduction <add>, %97, %cst_48 [1] : vector<8x16xf32> to vector<8xf32>
    %99 = vector.shape_cast %98 : vector<8xf32> to vector<8x1xf32>
    %100 = arith.divf %99, %92 : vector<8x1xf32>
    %101 = arith.subf %94, %100 : vector<8x1xf32>
    %102 = vector.broadcast %87 : vector<8x1xi32> to vector<8x16xi32>
    %103 = arith.cmpi eq, %1, %102 : vector<8x16xi32>
    %104 = arith.extui %103 : vector<8x16xi1> to vector<8x16xi32>
    %105 = arith.sitofp %104 : vector<8x16xi32> to vector<8x16xf32>
    %c1_49 = arith.constant 1 : index
    %c0_50 = arith.constant 0 : index
    %c0_51 = arith.constant 0 : index
    %106 = vector.load %arg5[%c1_49, %c0_50, %c0_51] : memref<4x16x32xf32, #tpu.memory_space<vmem>>, vector<1x16x32xf32>
    %107 = vector.shape_cast %106 : vector<1x16x32xf32> to vector<16x32xf32>
    %cst_52 = arith.constant dense<0.000000e+00> : vector<8x32xf32>
    %108 = tpu.matmul %105, %107, %cst_52 {dimension_numbers = #tpu.dot_dimension_numbers<[1], [0], [0], [1], [0, 0, 1, 1], [], []>} : vector<8x16xf32>, vector<16x32xf32>, vector<8x32xf32> -> vector<8x32xf32>
    %109 = arith.addf %51, %108 : vector<8x32xf32>
    %c0_53 = arith.constant 0 : index
    %c16 = arith.constant 16 : index
    %110 = vector.load %arg6[%c0_53, %c16] : memref<8x72xf32, #tpu.memory_space<vmem>>, vector<8x16xf32>
    tpu.vector_store %arg6[%c0_53, %c16], %79 {strides = array<i32>} : memref<8x72xf32, #tpu.memory_space<vmem>>, vector<8x16xf32>,
    %c1_i32 = arith.constant 1 : i32
    %111 = vector.broadcast %c1_i32 : i32 to vector<8x4xi32>
    %112 = arith.cmpi eq, %2, %111 : vector<8x4xi32>
    %113 = vector.shape_cast %87 : vector<8x1xi32> to vector<8x1xi32>
    %114 = vector.broadcast %113 : vector<8x1xi32> to vector<8x4xi32>
    %115 = arith.select %112, %114, %57 : vector<8x4xi1>, vector<8x4xi32>
    %116 = vector.shape_cast %96 : vector<8x1xf32> to vector<8x1xf32>
    %117 = vector.broadcast %116 : vector<8x1xf32> to vector<8x4xf32>
    %118 = arith.select %112, %117, %60 : vector<8x4xi1>, vector<8x4xf32>
    %119 = vector.shape_cast %101 : vector<8x1xf32> to vector<8x1xf32>
    %120 = vector.broadcast %119 : vector<8x1xf32> to vector<8x4xf32>
    %121 = arith.select %112, %120, %63 : vector<8x4xi1>, vector<8x4xf32>
    %c2 = arith.constant 2 : index
    %c0_54 = arith.constant 0 : index
    %c0_55 = arith.constant 0 : index
    %122 = vector.load %arg4[%c2, %c0_54, %c0_55] : memref<4x2x32xf32, #tpu.memory_space<vmem>>, vector<1x1x32xf32>
    %123 = vector.shape_cast %122 : vector<1x1x32xf32> to vector<1x32xf32>
    %c2_56 = arith.constant 2 : index
    %c1_57 = arith.constant 1 : index
    %c0_58 = arith.constant 0 : index
    %124 = vector.load %arg4[%c2_56, %c1_57, %c0_58] : memref<4x2x32xf32, #tpu.memory_space<vmem>>, vector<1x1x16xf32>
    %125 = vector.shape_cast %124 : vector<1x1x16xf32> to vector<1x16xf32>
    %c2_59 = arith.constant 2 : index
    %c0_60 = arith.constant 0 : index
    %c0_61 = arith.constant 0 : index
    %126 = vector.load %arg2[%c2_59, %c0_60, %c0_61] : memref<4x32x32xf32, #tpu.memory_space<vmem>>, vector<1x32x32xf32>
    %127 = vector.shape_cast %126 : vector<1x32x32xf32> to vector<32x32xf32>
    %cst_62 = arith.constant dense<0.000000e+00> : vector<8x32xf32>
    %128 = tpu.matmul %109, %127, %cst_62 {dimension_numbers = #tpu.dot_dimension_numbers<[1], [0], [0], [1], [0, 0, 1, 1], [], []>} : vector<8x32xf32>, vector<32x32xf32>, vector<8x32xf32> -> vector<8x32xf32>
    %129 = vector.broadcast %123 : vector<1x32xf32> to vector<8x32xf32>
    %130 = arith.addf %128, %129 : vector<8x32xf32>
    %cst_63 = arith.constant 0.000000e+00 : f32
    %131 = vector.broadcast %cst_63 : f32 to vector<8x32xf32>
    %132 = arith.maximumf %130, %131 : vector<8x32xf32>
    %c2_64 = arith.constant 2 : index
    %c0_65 = arith.constant 0 : index
    %c0_66 = arith.constant 0 : index
    %133 = vector.load %arg3[%c2_64, %c0_65, %c0_66] : memref<4x32x16xf32, #tpu.memory_space<vmem>>, vector<1x32x16xf32>
    %134 = vector.shape_cast %133 : vector<1x32x16xf32> to vector<32x16xf32>
    %cst_67 = arith.constant dense<0.000000e+00> : vector<8x16xf32>
    %135 = tpu.matmul %132, %134, %cst_67 {dimension_numbers = #tpu.dot_dimension_numbers<[1], [0], [0], [1], [0, 0, 1, 1], [], []>} : vector<8x32xf32>, vector<32x16xf32>, vector<8x16xf32> -> vector<8x16xf32>
    %136 = vector.broadcast %125 : vector<1x16xf32> to vector<8x16xf32>
    %137 = arith.addf %135, %136 : vector<8x16xf32>
    %cst_68 = arith.constant dense<0xFF800000> : vector<8xf32>
    %138 = vector.multi_reduction <maximumf>, %137, %cst_68 [1] : vector<8x16xf32> to vector<8xf32>
    %139 = vector.shape_cast %138 : vector<8xf32> to vector<8x1xf32>
    %140 = vector.broadcast %139 : vector<8x1xf32> to vector<8x16xf32>
    %141 = arith.cmpf oeq, %137, %140 : vector<8x16xf32>
    %c16_i32_69 = arith.constant 16 : i32
    %142 = vector.broadcast %c16_i32_69 : i32 to vector<8x16xi32>
    %143 = arith.select %141, %1, %142 : vector<8x16xi1>, vector<8x16xi32>
    %cst_70 = arith.constant dense<2147483647> : vector<8xi32>
    %144 = vector.multi_reduction <minsi>, %143, %cst_70 [1] : vector<8x16xi32> to vector<8xi32>
    %145 = vector.shape_cast %144 : vector<8xi32> to vector<8x1xi32>
    %146 = vector.broadcast %139 : vector<8x1xf32> to vector<8x16xf32>
    %147 = arith.subf %137, %146 : vector<8x16xf32>
    %148 = math.exp %147 : vector<8x16xf32>
    %cst_71 = arith.constant dense<0.000000e+00> : vector<8xf32>
    %149 = vector.multi_reduction <add>, %148, %cst_71 [1] : vector<8x16xf32> to vector<8xf32>
    %150 = vector.shape_cast %149 : vector<8xf32> to vector<8x1xf32>
    %151 = math.log %150 : vector<8x1xf32>
    %152 = arith.addf %139, %151 : vector<8x1xf32>
    %cst_72 = arith.constant 0.000000e+00 : f32
    %153 = vector.broadcast %cst_72 : f32 to vector<8x1xf32>
    %154 = arith.subf %153, %151 : vector<8x1xf32>
    %155 = arith.mulf %148, %137 : vector<8x16xf32>
    %cst_73 = arith.constant dense<0.000000e+00> : vector<8xf32>
    %156 = vector.multi_reduction <add>, %155, %cst_73 [1] : vector<8x16xf32> to vector<8xf32>
    %157 = vector.shape_cast %156 : vector<8xf32> to vector<8x1xf32>
    %158 = arith.divf %157, %150 : vector<8x1xf32>
    %159 = arith.subf %152, %158 : vector<8x1xf32>
    %160 = vector.broadcast %145 : vector<8x1xi32> to vector<8x16xi32>
    %161 = arith.cmpi eq, %1, %160 : vector<8x16xi32>
    %162 = arith.extui %161 : vector<8x16xi1> to vector<8x16xi32>
    %163 = arith.sitofp %162 : vector<8x16xi32> to vector<8x16xf32>
    %c2_74 = arith.constant 2 : index
    %c0_75 = arith.constant 0 : index
    %c0_76 = arith.constant 0 : index
    %164 = vector.load %arg5[%c2_74, %c0_75, %c0_76] : memref<4x16x32xf32, #tpu.memory_space<vmem>>, vector<1x16x32xf32>
    %165 = vector.shape_cast %164 : vector<1x16x32xf32> to vector<16x32xf32>
    %cst_77 = arith.constant dense<0.000000e+00> : vector<8x32xf32>
    %166 = tpu.matmul %163, %165, %cst_77 {dimension_numbers = #tpu.dot_dimension_numbers<[1], [0], [0], [1], [0, 0, 1, 1], [], []>} : vector<8x16xf32>, vector<16x32xf32>, vector<8x32xf32> -> vector<8x32xf32>
    %167 = arith.addf %109, %166 : vector<8x32xf32>
    %c0_78 = arith.constant 0 : index
    %c32 = arith.constant 32 : index
    %168 = vector.load %arg6[%c0_78, %c32] : memref<8x72xf32, #tpu.memory_space<vmem>>, vector<8x16xf32>
    tpu.vector_store %arg6[%c0_78, %c32], %137 {strides = array<i32>} : memref<8x72xf32, #tpu.memory_space<vmem>>, vector<8x16xf32>,
    %c2_i32 = arith.constant 2 : i32
    %169 = vector.broadcast %c2_i32 : i32 to vector<8x4xi32>
    %170 = arith.cmpi eq, %2, %169 : vector<8x4xi32>
    %171 = vector.shape_cast %145 : vector<8x1xi32> to vector<8x1xi32>
    %172 = vector.broadcast %171 : vector<8x1xi32> to vector<8x4xi32>
    %173 = arith.select %170, %172, %115 : vector<8x4xi1>, vector<8x4xi32>
    %174 = vector.shape_cast %154 : vector<8x1xf32> to vector<8x1xf32>
    %175 = vector.broadcast %174 : vector<8x1xf32> to vector<8x4xf32>
    %176 = arith.select %170, %175, %118 : vector<8x4xi1>, vector<8x4xf32>
    %177 = vector.shape_cast %159 : vector<8x1xf32> to vector<8x1xf32>
    %178 = vector.broadcast %177 : vector<8x1xf32> to vector<8x4xf32>
    %179 = arith.select %170, %178, %121 : vector<8x4xi1>, vector<8x4xf32>
    %c3 = arith.constant 3 : index
    %c0_79 = arith.constant 0 : index
    %c0_80 = arith.constant 0 : index
    %180 = vector.load %arg4[%c3, %c0_79, %c0_80] : memref<4x2x32xf32, #tpu.memory_space<vmem>>, vector<1x1x32xf32>
    %181 = vector.shape_cast %180 : vector<1x1x32xf32> to vector<1x32xf32>
    %c3_81 = arith.constant 3 : index
    %c1_82 = arith.constant 1 : index
    %c0_83 = arith.constant 0 : index
    %182 = vector.load %arg4[%c3_81, %c1_82, %c0_83] : memref<4x2x32xf32, #tpu.memory_space<vmem>>, vector<1x1x16xf32>
    %183 = vector.shape_cast %182 : vector<1x1x16xf32> to vector<1x16xf32>
    %c3_84 = arith.constant 3 : index
    %c0_85 = arith.constant 0 : index
    %c0_86 = arith.constant 0 : index
    %184 = vector.load %arg2[%c3_84, %c0_85, %c0_86] : memref<4x32x32xf32, #tpu.memory_space<vmem>>, vector<1x32x32xf32>
    %185 = vector.shape_cast %184 : vector<1x32x32xf32> to vector<32x32xf32>
    %cst_87 = arith.constant dense<0.000000e+00> : vector<8x32xf32>
    %186 = tpu.matmul %167, %185, %cst_87 {dimension_numbers = #tpu.dot_dimension_numbers<[1], [0], [0], [1], [0, 0, 1, 1], [], []>} : vector<8x32xf32>, vector<32x32xf32>, vector<8x32xf32> -> vector<8x32xf32>
    %187 = vector.broadcast %181 : vector<1x32xf32> to vector<8x32xf32>
    %188 = arith.addf %186, %187 : vector<8x32xf32>
    %cst_88 = arith.constant 0.000000e+00 : f32
    %189 = vector.broadcast %cst_88 : f32 to vector<8x32xf32>
    %190 = arith.maximumf %188, %189 : vector<8x32xf32>
    %c3_89 = arith.constant 3 : index
    %c0_90 = arith.constant 0 : index
    %c0_91 = arith.constant 0 : index
    %191 = vector.load %arg3[%c3_89, %c0_90, %c0_91] : memref<4x32x16xf32, #tpu.memory_space<vmem>>, vector<1x32x16xf32>
    %192 = vector.shape_cast %191 : vector<1x32x16xf32> to vector<32x16xf32>
    %cst_92 = arith.constant dense<0.000000e+00> : vector<8x16xf32>
    %193 = tpu.matmul %190, %192, %cst_92 {dimension_numbers = #tpu.dot_dimension_numbers<[1], [0], [0], [1], [0, 0, 1, 1], [], []>} : vector<8x32xf32>, vector<32x16xf32>, vector<8x16xf32> -> vector<8x16xf32>
    %194 = vector.broadcast %183 : vector<1x16xf32> to vector<8x16xf32>
    %195 = arith.addf %193, %194 : vector<8x16xf32>
    %cst_93 = arith.constant dense<0xFF800000> : vector<8xf32>
    %196 = vector.multi_reduction <maximumf>, %195, %cst_93 [1] : vector<8x16xf32> to vector<8xf32>
    %197 = vector.shape_cast %196 : vector<8xf32> to vector<8x1xf32>
    %198 = vector.broadcast %197 : vector<8x1xf32> to vector<8x16xf32>
    %199 = arith.cmpf oeq, %195, %198 : vector<8x16xf32>
    %c16_i32_94 = arith.constant 16 : i32
    %200 = vector.broadcast %c16_i32_94 : i32 to vector<8x16xi32>
    %201 = arith.select %199, %1, %200 : vector<8x16xi1>, vector<8x16xi32>
    %cst_95 = arith.constant dense<2147483647> : vector<8xi32>
    %202 = vector.multi_reduction <minsi>, %201, %cst_95 [1] : vector<8x16xi32> to vector<8xi32>
    %203 = vector.shape_cast %202 : vector<8xi32> to vector<8x1xi32>
    %204 = vector.broadcast %197 : vector<8x1xf32> to vector<8x16xf32>
    %205 = arith.subf %195, %204 : vector<8x16xf32>
    %206 = math.exp %205 : vector<8x16xf32>
    %cst_96 = arith.constant dense<0.000000e+00> : vector<8xf32>
    %207 = vector.multi_reduction <add>, %206, %cst_96 [1] : vector<8x16xf32> to vector<8xf32>
    %208 = vector.shape_cast %207 : vector<8xf32> to vector<8x1xf32>
    %209 = math.log %208 : vector<8x1xf32>
    %210 = arith.addf %197, %209 : vector<8x1xf32>
    %cst_97 = arith.constant 0.000000e+00 : f32
    %211 = vector.broadcast %cst_97 : f32 to vector<8x1xf32>
    %212 = arith.subf %211, %209 : vector<8x1xf32>
    %213 = arith.mulf %206, %195 : vector<8x16xf32>
    %cst_98 = arith.constant dense<0.000000e+00> : vector<8xf32>
    %214 = vector.multi_reduction <add>, %213, %cst_98 [1] : vector<8x16xf32> to vector<8xf32>
    %215 = vector.shape_cast %214 : vector<8xf32> to vector<8x1xf32>
    %216 = arith.divf %215, %208 : vector<8x1xf32>
    %217 = arith.subf %210, %216 : vector<8x1xf32>
    %218 = vector.broadcast %203 : vector<8x1xi32> to vector<8x16xi32>
    %219 = arith.cmpi eq, %1, %218 : vector<8x16xi32>
    %220 = arith.extui %219 : vector<8x16xi1> to vector<8x16xi32>
    %221 = arith.sitofp %220 : vector<8x16xi32> to vector<8x16xf32>
    %c3_99 = arith.constant 3 : index
    %c0_100 = arith.constant 0 : index
    %c0_101 = arith.constant 0 : index
    %222 = vector.load %arg5[%c3_99, %c0_100, %c0_101] : memref<4x16x32xf32, #tpu.memory_space<vmem>>, vector<1x16x32xf32>
    %223 = vector.shape_cast %222 : vector<1x16x32xf32> to vector<16x32xf32>
    %cst_102 = arith.constant dense<0.000000e+00> : vector<8x32xf32>
    %224 = tpu.matmul %221, %223, %cst_102 {dimension_numbers = #tpu.dot_dimension_numbers<[1], [0], [0], [1], [0, 0, 1, 1], [], []>} : vector<8x16xf32>, vector<16x32xf32>, vector<8x32xf32> -> vector<8x32xf32>
    %225 = arith.addf %167, %224 : vector<8x32xf32>
    %c0_103 = arith.constant 0 : index
    %c48 = arith.constant 48 : index
    %226 = vector.load %arg6[%c0_103, %c48] : memref<8x72xf32, #tpu.memory_space<vmem>>, vector<8x16xf32>
    tpu.vector_store %arg6[%c0_103, %c48], %195 {strides = array<i32>} : memref<8x72xf32, #tpu.memory_space<vmem>>, vector<8x16xf32>,
    %c3_i32 = arith.constant 3 : i32
    %227 = vector.broadcast %c3_i32 : i32 to vector<8x4xi32>
    %228 = arith.cmpi eq, %2, %227 : vector<8x4xi32>
    %229 = vector.shape_cast %203 : vector<8x1xi32> to vector<8x1xi32>
    %230 = vector.broadcast %229 : vector<8x1xi32> to vector<8x4xi32>
    %231 = arith.select %228, %230, %173 : vector<8x4xi1>, vector<8x4xi32>
    %232 = vector.shape_cast %212 : vector<8x1xf32> to vector<8x1xf32>
    %233 = vector.broadcast %232 : vector<8x1xf32> to vector<8x4xf32>
    %234 = arith.select %228, %233, %176 : vector<8x4xi1>, vector<8x4xf32>
    %235 = vector.shape_cast %217 : vector<8x1xf32> to vector<8x1xf32>
    %236 = vector.broadcast %235 : vector<8x1xf32> to vector<8x4xf32>
    %237 = arith.select %228, %236, %179 : vector<8x4xi1>, vector<8x4xf32>
    %c0_104 = arith.constant 0 : index
    %c64 = arith.constant 64 : index
    %238 = vector.load %arg6[%c0_104, %c64] : memref<8x72xf32, #tpu.memory_space<vmem>>, vector<8x4xf32>
    tpu.vector_store %arg6[%c0_104, %c64], %234 {strides = array<i32>} : memref<8x72xf32, #tpu.memory_space<vmem>>, vector<8x4xf32>,
    %c0_105 = arith.constant 0 : index
    %c68 = arith.constant 68 : index
    %239 = vector.load %arg6[%c0_105, %c68] : memref<8x72xf32, #tpu.memory_space<vmem>>, vector<8x4xf32>
    tpu.vector_store %arg6[%c0_105, %c68], %237 {strides = array<i32>} : memref<8x72xf32, #tpu.memory_space<vmem>>, vector<8x4xf32>,
    %c0_106 = arith.constant 0 : index
    %c0_107 = arith.constant 0 : index
    %240 = vector.load %arg7[%c0_106, %c0_107] : memref<8x4xi32, #tpu.memory_space<vmem>>, vector<8x4xi32>
    tpu.vector_store %arg7[%c0_106, %c0_107], %231 {strides = array<i32>} : memref<8x4xi32, #tpu.memory_space<vmem>>, vector<8x4xi32>,
    %c0_108 = arith.constant 0 : index
    %c0_109 = arith.constant 0 : index
    %241 = vector.load %arg8[%c0_108, %c0_109] : memref<8x32xf32, #tpu.memory_space<vmem>>, vector<8x32xf32>
    tpu.vector_store %arg8[%c0_108, %c0_109], %225 {strides = array<i32>} : memref<8x32xf32, #tpu.memory_space<vmem>>, vector<8x32xf32>,
    return
  }
  func.func @transform_0(%arg0: i32) -> (i32, i32) {
    %c0_i32 = arith.constant 0 : i32
    %c0_i32_0 = arith.constant 0 : i32
    return %arg0, %c0_i32 : i32, i32
  }
  func.func @transform_1(%arg0: i32) -> (i32, i32, i32) {
    %c0_i32 = arith.constant 0 : i32
    %c0_i32_0 = arith.constant 0 : i32
    %c0_i32_1 = arith.constant 0 : i32
    %c0_i32_2 = arith.constant 0 : i32
    return %c0_i32, %c0_i32_0, %c0_i32_1 : i32, i32, i32
  }
  func.func @transform_2(%arg0: i32) -> (i32, i32, i32) {
    %c0_i32 = arith.constant 0 : i32
    %c0_i32_0 = arith.constant 0 : i32
    %c0_i32_1 = arith.constant 0 : i32
    %c0_i32_2 = arith.constant 0 : i32
    return %c0_i32, %c0_i32_0, %c0_i32_1 : i32, i32, i32
  }
  func.func @transform_3(%arg0: i32) -> (i32, i32, i32) {
    %c0_i32 = arith.constant 0 : i32
    %c0_i32_0 = arith.constant 0 : i32
    %c0_i32_1 = arith.constant 0 : i32
    %c0_i32_2 = arith.constant 0 : i32
    return %c0_i32, %c0_i32_0, %c0_i32_1 : i32, i32, i32
  }
  func.func @transform_4(%arg0: i32) -> (i32, i32, i32) {
    %c0_i32 = arith.constant 0 : i32
    %c0_i32_0 = arith.constant 0 : i32
    %c0_i32_1 = arith.constant 0 : i32
    %c0_i32_2 = arith.constant 0 : i32
    return %c0_i32, %c0_i32_0, %c0_i32_1 : i32, i32, i32
  }
  func.func @transform_5(%arg0: i32) -> (i32, i32) {
    %c0_i32 = arith.constant 0 : i32
    %c0_i32_0 = arith.constant 0 : i32
    return %arg0, %c0_i32 : i32, i32
  }
  func.func @transform_6(%arg0: i32) -> (i32, i32) {
    %c0_i32 = arith.constant 0 : i32
    %c0_i32_0 = arith.constant 0 : i32
    return %arg0, %c0_i32 : i32, i32
  }
  func.func @transform_7(%arg0: i32) -> (i32, i32) {
    %c0_i32 = arith.constant 0 : i32
    %c0_i32_0 = arith.constant 0 : i32
    return %arg0, %c0_i32 : i32, i32
  }
}

</mosaic_0001>

<bundles_post_ra>
// kernel: multidiscrete_auto_decoder.1
= control target key start
LH: loop header
LB: loop body
LE: loop exit
PB: predicated region body
PF: predicated region fallthrough
CT: control target
= control target key end

     0   :  { %v1546_v0 = vmov 0.0|0.0   ;;  %vm1547_vm0 = vmmov 0   ;;  %v1548_v4 = vmov 0.0   ;;  %vm36_vm1 = vcmask 261120   ;;  %s1550_s28 = smov 32   ;;  %s1552_s11 = smov 64   ;;  %s1955_s1 = inlined_call_operand.vmem [shape: f32[4,32,32], index: 1, kind: input, shape index: {}]   ;;  %s1956_s2 = inlined_call_operand.vmem [shape: f32[4,32,16], index: 2, kind: input, shape index: {}]   ;;  %s1957_s0 = inlined_call_operand.vmem [shape: f32[8,32], index: 0, kind: input, shape index: {}, may-alias: {0,7}]   ;;  %s1958_s3 = inlined_call_operand.vmem [shape: f32[4,2,32], index: 3, kind: input, shape index: {}]   ;;  %s1959_s5 = inlined_call_operand.vmem [shape: f32[8,72], index: 5, kind: output, shape index: {0}]   ;;  %s1960_s4 = inlined_call_operand.vmem [shape: f32[4,16,32], index: 4, kind: input, shape index: {}]   ;;  %s1961_s6 = inlined_call_operand.vmem [shape: s32[8,4], index: 6, kind: output, shape index: {1}]   ;;  %s1962_s7 = inlined_call_operand.vmem [shape: f32[8,32], index: 7, kind: output, shape index: {2}, may-alias: {0,7}]  }
   0x1   :  { %1454 = vmatprep.subr.bf16.mxu0 %v1546_v0  ;;  %v28_v1 = vld [vmem:[%s1955_s1] sm:$0xff]  ;;  %v29_v2 = vld [vmem:[%s1955_s1 + $0x8] sm:$0xff]  ;;  %v30_v3 = vld [vmem:[%s1955_s1 + $0x10] sm:$0xff]  ;;  %1346 = vmatprep.mubr.msk.f32.mxu0 %vm1547_vm0, %v1548_v4  ;;  %vm192_vm2 = vcmask 130048   ;;  %v24_v25 = vlaneseq  ;;  %s1553_s12 = smov 68  }
   0x2   :  { %v1455_v5 = vpack.c.bf16 %v29_v2, %v28_v1  ;;  %v31_v6 = vld [vmem:[%s1955_s1 + $0x18] sm:$0xff]  ;;  %1460 = vmatprep.subr.bf16.mxu1 %v1546_v0  ;;  %v111_v7 = vld [vmem:[%s1956_s2] sm:$0xff]  ;;  %1357 = vmatprep.mubr.msk.f32.mxu1 %vm1547_vm0, %v1548_v4  ;;  %v112_v8 = vld [vmem:[%s1956_s2 + $0x8] sm:$0xff] }
   0x3   :  { %v1458_v9 = vpack.c.bf16 %v31_v6, %v30_v3  ;;  %v1461_v10 = vpack.c.bf16 %v112_v8, %v111_v7  ;;  %v1623_v11 = vld [vmem:[%s1957_s0] sm:$0xff]  ;;  %v113_v12 = vld [vmem:[%s1956_s2 + $0x10] sm:$0xff]  ;;  %v114_v13 = vld [vmem:[%s1956_s2 + $0x18] sm:$0xff]  ;;  %v1655_v26 = vand.u32 127, %v24_v25 }
   0x4   :  { %1456 = vmatpush3.bf16.msra.mxu0 %v1455_v5  ;;  %v1464_v14 = vpack.c.bf16 %v114_v13, %v113_v12  ;;  %v1226_v15 = vld [vmem:[%s1958_s3] ss:$0 sm:$0xff]  ;;  %v1228_v20 = vld [vmem:[%s1958_s3 + $0x1] ss:$0 sm:$0xff]  ;;  %v234_v37 = vld [vmem:[%s1960_s4 + $0x8] sm:$0xff] }
   0x5   :  { %1457 = vmatprep.subr.bf16.mxu0 %v1546_v0  ;;  %1462 = vmatpush3.bf16.msra.mxu1 %v1461_v10  ;;  %v233_v36 = vld [vmem:[%s1960_s4] sm:$0xff]  ;;  %v1235_v40 = vld [vmem:[%s1955_s1 + $0x28] sm:$0xff]  ;;  %v1236_v48 = vld [vmem:[%s1955_s1 + $0x30] sm:$0xff]  ;;  %vm310_vm8 = vcmp.eq.s32.totalorder %v1655_v26, 0  ;;  %vm605_vm9 = vcmp.eq.s32.totalorder %v1655_v26, 1  ;;  %vm900_vm13 = vcmp.eq.s32.totalorder %v1655_v26, 2 }
   0x6   :  { %1463 = vmatprep.subr.bf16.mxu1 %v1546_v0  ;;  %v1467_v38 = vpack.c.bf16 %v234_v37, %v233_v36  ;;  %v1234_v39 = vld [vmem:[%s1955_s1 + $0x20] sm:$0xff]  ;;  %v1237_v49 = vld [vmem:[%s1955_s1 + $0x38] sm:$0xff]  ;;  %v1241_v52 = vld [vmem:[%s1956_s2 + $0x28] sm:$0xff] }
   0x7   :  { %v1470_v41 = vpack.c.bf16 %v1235_v40, %v1234_v39  ;;  %v1473_v50 = vpack.c.bf16 %v1237_v49, %v1236_v48  ;;  %v1240_v51 = vld [vmem:[%s1956_s2 + $0x20] sm:$0xff]  ;;  %v1242_v57 = vld [vmem:[%s1956_s2 + $0x30] sm:$0xff]  ;;  %v1243_v58 = vld [vmem:[%s1956_s2 + $0x38] sm:$0xff] }
   0x8   :  { %1459 = vmatpush3.bf16.msra.mxu0 %v1458_v9  ;;  %v1476_v53 = vpack.c.bf16 %v1241_v52, %v1240_v51  ;;  %v1479_v59 = vpack.c.bf16 %v1243_v58, %v1242_v57  ;;  %v1238_v60 = vld [vmem:[%s1958_s3 + $0x2] ss:$0 sm:$0xff]  ;;  %v1244_v2 = vld [vmem:[%s1958_s3 + $0x3] ss:$0 sm:$0xff]  ;;  %v1262_v51 = vld [vmem:[%s1958_s3 + $0x5] ss:$0 sm:$0xff] }
   0x9   :  { %1466 = vmatprep.subr.bf16.mxu0 %v1546_v0  ;;  %1465 = vmatpush3.bf16.msra.mxu1 %v1464_v14  ;;  %v1258_v37 = vld [vmem:[%s1956_s2 + $0x40] sm:$0xff] }
   0xa   :  { %1469 = vmatprep.subr.bf16.mxu1 %v1546_v0 }
   0xb   :  { %1347 = vmatmul.mubr.msk.f32.vlgmr.msra.gmra.mrb[0].mxu0 %vm36_vm1, %v1623_v11 }
   0xc   :  { %1364 = vmatprep.mubr.msk.f32.mxu0 %vm1547_vm0, %v1548_v4  ;;  %1468 = vmatpush3.bf16.msra.mxu0 %v1467_v38  ;;  %v1259_v38 = vld [vmem:[%s1956_s2 + $0x48] sm:$0xff] }
   0xd   :  { %1475 = vmatprep.subr.bf16.mxu0 %v1546_v0  ;;  %v1491_v39 = vpack.c.bf16 %v1259_v38, %v1258_v37  ;;  %v1280_v37 = vld [vmem:[%s1958_s3 + $0x7] ss:$0 sm:$0xff] }
  0xde   :  { %v106_v16 = vpop.f32.mrb[0].mxu0 }
  0xdf   :  { %v107_v17 = vadd.f32 %v1226_v15, %v106_v16  ;;  %v1348_v18 = vpop.f32.mrb[1].mxu0 }
  0xe0   :  { %v1248_v18 = vld [vmem:[%s1960_s4 + $0x18] sm:$0xff] }
  0xe1   :  { %v110_v19 = vmax.f32 %v107_v17, 0.0  ;;  %v1247_v17 = vld [vmem:[%s1960_s4 + $0x10] sm:$0xff] }
  0xe3   :  { %1358 = vmatmul.mubr.msk.f32.vlgmr.msra.gmra.mrb[0].mxu1 %vm36_vm1, %v110_v19  ;;  %v1482_v19 = vpack.c.bf16 %v1248_v18, %v1247_v17  ;;  %v1272_v18 = vld [vmem:[%s1955_s1 + $0x70] sm:$0xff] }
  0xe4   :  { %1375 = vmatprep.mubr.msk.f32.mxu1 %vm1547_vm0, %v1548_v4  ;;  %1471 = vmatpush3.bf16.msra.mxu1 %v1470_v41 }
  0xe5   :  { %1472 = vmatprep.subr.bf16.mxu1 %v1546_v0 }
  0xe8   :  { %1474 = vmatpush3.bf16.msra.mxu1 %v1473_v50 }
  0xe9   :  { %1481 = vmatprep.subr.bf16.mxu1 %v1546_v0 }
 0x1b6   :  { %v188_v21 = vpop.f32.mrb[0].mxu1 }
 0x1b7   :  { %v1646_v22 = vadd.f32 %v1228_v20, %v188_v21  ;;  %v1359_v23 = vpop.f32.mrb[1].mxu1  ;;  %v1252_v20 = vld [vmem:[%s1955_s1 + $0x40] sm:$0xff]  ;;  %v1253_v21 = vld [vmem:[%s1955_s1 + $0x48] sm:$0xff] }
 0x1b8   :  { %v1485_v23 = vpack.c.bf16 %v1253_v21, %v1252_v20  ;;  %v1276_v21 = vld [vmem:[%s1956_s2 + $0x60] sm:$0xff] }
 0x1b9   :  { %v193_v24 = vsel %vm192_vm2, %v1646_v22, -inf  ;;  %309 = vst.msk [vmem:[%s1959_s5] sm:$0xff] %vm192_vm2, %v1646_v22 }
 0x1ba   :  { %194 = vmax.xlane.f32.xlu0 %v193_v24 }
 0x247   :  { %v1657_v27 = vpop.xlane.xlu0 %194 }
 0x248   :  { %vm196_vm3 = vcmp.eq.f32.partialorder %v1646_v22, %v1657_v27 }
 0x249   :  { %v197_v28 = vsel %vm196_vm3, %v1655_v26, 16  ;;  %vm603_vm3 = vcmask 261248  }
 0x24a   :  { %v198_v29 = vsel %vm192_vm2, %v197_v28, 2147483647 }
 0x24b   :  { %v200_v30 = vshra.s32 %v198_v29, 16  ;;  %v199_v32 = vand.u32 65535, %v198_v29 }
 0x24d   :  { %v202_v31 = vcvt.s32.f32 %v200_v30  ;;  %v201_v34 = vcvt.s32.f32 %v199_v32 }
 0x24f   :  { %203 = vmin.xlane.f32.xlu0 %v202_v31 }
 0x2dc   :  { %v204_v33 = vpop.xlane.xlu0 %203 }
 0x2dd   :  { %vm205_vm4 = vcmp.eq.f32.partialorder %v202_v31, %v204_v33  ;;  %v210_v42 = vcvt.f32.s32 %v204_v33 }
 0x2de   :  { %v206_v35 = vsel %vm205_vm4, %v201_v34, inf  ;;  %v1254_v34 = vld [vmem:[%s1955_s1 + $0x50] sm:$0xff]  ;;  %vm1195_vm4 = vcmp.eq.s32.totalorder %v1655_v26, 3 }
 0x2df   :  { %207 = vmin.xlane.f32.xlu1 %v206_v35  ;;  %v211_v44 = vshll.u32 %v210_v42, 16  ;;  %v1255_v35 = vld [vmem:[%s1955_s1 + $0x58] sm:$0xff] }
 0x2e0   :  { %v1488_v36 = vpack.c.bf16 %v1255_v35, %v1254_v34 }
 0x36c   :  { %v208_v43 = vpop.xlane.xlu1 %207 }
 0x36d   :  { %v209_v45 = vcvt.f32.s32 %v208_v43  ;;  %v1260_v43 = vld [vmem:[%s1956_s2 + $0x50] sm:$0xff] }
 0x36f   :  { %v1677_v46 = vadd.s32 %v211_v44, %v209_v45  ;;  %v1261_v44 = vld [vmem:[%s1956_s2 + $0x58] sm:$0xff] }
 0x370   :  { %v1494_v45 = vpack.c.bf16 %v1261_v44, %v1260_v43 }
 0x371   :  { %vm230_vm5 = vcmp.eq.s32.totalorder %v1655_v26, %v1677_v46  ;;  %v311_v31 = vsel %vm310_vm8, %v1677_v46, 0  ;;  %v1256_v46 = vld [vmem:[%s1958_s3 + $0x4] ss:$0 sm:$0xff] }
 0x372   :  { %v1230_v47 = vsel %vm230_vm5, 1.0, %v1548_v4  ;;  %vm1211_vm5 = vcmask 31744  }
 0x373   :  { %1365 = vmatmul.mubr.msk.f32.vlgmr.msra.gmra.mrb[2].mxu0 %vm192_vm2, %v1230_v47 }
 0x374   :  { %1386 = vmatprep.mubr.msk.f32.mxu0 %vm1547_vm0, %v1548_v4  ;;  %1477 = vmatpush3.bf16.msra.mxu0 %v1476_v53 }
 0x375   :  { %1478 = vmatprep.subr.bf16.mxu0 %v1546_v0 }
 0x378   :  { %1480 = vmatpush3.bf16.msra.mxu0 %v1479_v59 }
 0x379   :  { %1484 = vmatprep.subr.bf16.mxu0 %v1546_v0 }
 0x446   :  { %v304_v54 = vpop.f32.mrb[2].mxu0 }
 0x447   :  { %v1700_v55 = vadd.f32 %v304_v54, %v1623_v11  ;;  %v1366_v56 = vpop.f32.mrb[3].mxu0 }
 0x449   :  { %1376 = vmatmul.mubr.msk.f32.vlgmr.msra.gmra.mrb[2].mxu1 %vm36_vm1, %v1700_v55 }
 0x44a   :  { %1393 = vmatprep.mubr.msk.f32.mxu1 %vm1547_vm0, %v1548_v4  ;;  %1483 = vmatpush3.bf16.msra.mxu1 %v1482_v19  ;;  %v1273_v19 = vld [vmem:[%s1955_s1 + $0x78] sm:$0xff] }
 0x44b   :  { %1490 = vmatprep.subr.bf16.mxu1 %v1546_v0  ;;  %v1503_v20 = vpack.c.bf16 %v1273_v19, %v1272_v18 }
 0x51c   :  { %v395_v61 = vpop.f32.mrb[2].mxu1 }
 0x51d   :  { %v396_v62 = vadd.f32 %v1238_v60, %v395_v61  ;;  %v1377_v63 = vpop.f32.mrb[3].mxu1 }
 0x51f   :  { %v399_v1 = vmax.f32 %v396_v62, 0.0 }
 0x521   :  { %1387 = vmatmul.mubr.msk.f32.vlgmr.msra.gmra.mrb[4].mxu0 %vm36_vm1, %v399_v1 }
 0x522   :  { %1404 = vmatprep.mubr.msk.f32.mxu0 %vm1547_vm0, %v1548_v4  ;;  %1486 = vmatpush3.bf16.msra.mxu0 %v1485_v23  ;;  %v1277_v23 = vld [vmem:[%s1956_s2 + $0x68] sm:$0xff] }
 0x523   :  { %1487 = vmatprep.subr.bf16.mxu0 %v1546_v0 }
 0x526   :  { %1489 = vmatpush3.bf16.msra.mxu0 %v1488_v36 }
 0x527   :  { %1496 = vmatprep.subr.bf16.mxu0 %v1546_v0 }
 0x5f4   :  { %v478_v3 = vpop.f32.mrb[4].mxu0 }
 0x5f5   :  { %v1722_v5 = vadd.f32 %v1244_v2, %v478_v3  ;;  %v1388_v6 = vpop.f32.mrb[5].mxu0  ;;  %v1265_v2 = vld [vmem:[%s1960_s4 + $0x20] sm:$0xff]  ;;  %v1266_v3 = vld [vmem:[%s1960_s4 + $0x28] sm:$0xff] }
 0x5f6   :  { %v1497_v6 = vpack.c.bf16 %v1266_v3, %v1265_v2 }
 0x5f7   :  { %v482_v7 = vsel %vm192_vm2, %v1722_v5, -inf }
 0x5f8   :  { %483 = vmax.xlane.f32.xlu1 %v482_v7  ;;  %v1270_v7 = vld [vmem:[%s1955_s1 + $0x60] sm:$0xff] }
 0x685   :  { %v1726_v8 = vpop.xlane.xlu1 %483 }
 0x686   :  { %vm485_vm6 = vcmp.eq.f32.partialorder %v1722_v5, %v1726_v8 }
 0x687   :  { %v486_v9 = vsel %vm485_vm6, %v1655_v26, 16 }
 0x688   :  { %v487_v10 = vsel %vm192_vm2, %v486_v9, 2147483647  ;;  %v1271_v9 = vld [vmem:[%s1955_s1 + $0x68] sm:$0xff] }
 0x689   :  { %v489_v11 = vshra.s32 %v487_v10, 16  ;;  %v488_v13 = vand.u32 65535, %v487_v10  ;;  %v1500_v10 = vpack.c.bf16 %v1271_v9, %v1270_v7 }
 0x68b   :  { %v491_v12 = vcvt.s32.f32 %v489_v11  ;;  %v490_v15 = vcvt.s32.f32 %v488_v13 }
 0x68d   :  { %492 = vmin.xlane.f32.xlu0 %v491_v12 }
 0x71a   :  { %v493_v14 = vpop.xlane.xlu0 %492 }
 0x71b   :  { %vm494_vm7 = vcmp.eq.f32.partialorder %v491_v12, %v493_v14  ;;  %v499_v24 = vcvt.f32.s32 %v493_v14 }
 0x71c   :  { %v495_v16 = vsel %vm494_vm7, %v490_v15, inf  ;;  %vm898_vm7 = vcmask 392448  }
 0x71d   :  { %496 = vmin.xlane.f32.xlu1 %v495_v16  ;;  %v500_v28 = vshll.u32 %v499_v24, 16  ;;  %v1506_v24 = vpack.c.bf16 %v1277_v23, %v1276_v21 }
 0x7aa   :  { %v497_v25 = vpop.xlane.xlu1 %496 }
 0x7ab   :  { %v498_v29 = vcvt.f32.s32 %v497_v25 }
 0x7ad   :  { %v501_v30 = vadd.s32 %v500_v28, %v498_v29 }
 0x7af   :  { %vm519_vm10 = vcmp.eq.s32.totalorder %v1655_v26, %v501_v30  ;;  %v1754_v32 = vsel %vm605_vm9, %v501_v30, %v311_v31  ;;  %v1278_v30 = vld [vmem:[%s1956_s2 + $0x70] sm:$0xff]  ;;  %v1279_v31 = vld [vmem:[%s1956_s2 + $0x78] sm:$0xff]  ;;  %s1549_s2 = smov 16  }
 0x7b0   :  { %v1246_v33 = vsel %vm519_vm10, 1.0, %v1548_v4 }
 0x7b1   :  { %1394 = vmatmul.mubr.msk.f32.vlgmr.msra.gmra.mrb[4].mxu1 %vm192_vm2, %v1246_v33 }
 0x7b2   :  { %1415 = vmatprep.mubr.msk.f32.mxu1 %vm1547_vm0, %v1548_v4  ;;  %1492 = vmatpush3.bf16.msra.mxu1 %v1491_v39 }
 0x7b3   :  { %1493 = vmatprep.subr.bf16.mxu1 %v1546_v0 }
 0x7b6   :  { %1495 = vmatpush3.bf16.msra.mxu1 %v1494_v45 }
 0x7b7   :  { %1499 = vmatprep.subr.bf16.mxu1 %v1546_v0 }
 0x884   :  { %v594_v40 = vpop.f32.mrb[4].mxu1 }
 0x885   :  { %v1775_v41 = vadd.f32 %v594_v40, %v1700_v55  ;;  %v1395_v42 = vpop.f32.mrb[5].mxu1 }
 0x886   :  { %v213_v42 = vsub.f32 %v1646_v22, %v1657_v27 }
 0x887   :  { %1405 = vmatmul.mubr.msk.f32.vlgmr.msra.gmra.mrb[6].mxu0 %vm36_vm1, %v1775_v41 }
 0x888   :  { %1422 = vmatprep.mubr.msk.f32.mxu0 %vm1547_vm0, %v1548_v4  ;;  %1498 = vmatpush3.bf16.msra.mxu0 %v1497_v6  ;;  %v214_v43 = vmul.f32 1.442695, %v213_v42 }
 0x889   :  { %1505 = vmatprep.subr.bf16.mxu0 %v1546_v0 }
 0x88a   :  { %1522 = vpow2.f32 %v214_v43 }
 0x95a   :  { %v690_v47 = vpop.f32.mrb[6].mxu0 }
 0x95b   :  { %v691_v48 = vadd.f32 %v1256_v46, %v690_v47  ;;  %v1406_v49 = vpop.f32.mrb[7].mxu0 }
 0x95d   :  { %v694_v50 = vmax.f32 %v691_v48, 0.0 }
 0x95f   :  { %1416 = vmatmul.mubr.msk.f32.vlgmr.msra.gmra.mrb[6].mxu1 %vm36_vm1, %v694_v50 }
 0x960   :  { %1433 = vmatprep.mubr.msk.f32.mxu1 %vm1547_vm0, %v1548_v4  ;;  %1501 = vmatpush3.bf16.msra.mxu1 %v1500_v10 }
 0x961   :  { %1502 = vmatprep.subr.bf16.mxu1 %v1546_v0 }
 0x964   :  { %1504 = vmatpush3.bf16.msra.mxu1 %v1503_v20 }
 0x965   :  { %1511 = vmatprep.subr.bf16.mxu1 %v1546_v0 }
 0xa32   :  { %v773_v52 = vpop.f32.mrb[6].mxu1 }
 0xa33   :  { %v1797_v53 = vadd.f32 %v1262_v51, %v773_v52  ;;  %v1417_v54 = vpop.f32.mrb[7].mxu1  ;;  %v1523_v51 = vpop.eup %1522 }
 0xa34   :  { %v216_v52 = vsel %vm192_vm2, %v1523_v51, 0.0 }
 0xa35   :  { %v777_v55 = vsel %vm192_vm2, %v1797_v53, -inf }
 0xa36   :  { %778 = vmax.xlane.f32.xlu0 %v777_v55 }
 0xac3   :  { %v1801_v56 = vpop.xlane.xlu0 %778 }
 0xac4   :  { %vm780_vm11 = vcmp.eq.f32.partialorder %v1797_v53, %v1801_v56  ;;  %v797_v44 = vsub.f32 %v1797_v53, %v1801_v56 }
 0xac5   :  { %v781_v57 = vsel %vm780_vm11, %v1655_v26, 16 }
 0xac6   :  { %v782_v58 = vsel %vm192_vm2, %v781_v57, 2147483647  ;;  %v798_v45 = vmul.f32 1.442695, %v797_v44  ;;  %v223_v57 = vmul.f32 %v1523_v51, %v1646_v22 }
 0xac7   :  { %v784_v59 = vshra.s32 %v782_v58, 16  ;;  %v783_v61 = vand.u32 65535, %v782_v58 }
 0xac8   :  { %1524 = vpow2.f32 %v798_v45  ;;  %v224_v58 = vsel %vm192_vm2, %v223_v57, 0.0 }
 0xac9   :  { %v786_v60 = vcvt.s32.f32 %v784_v59  ;;  %v785_v63 = vcvt.s32.f32 %v783_v61  ;;  %v502_v61 = vsub.f32 %v1722_v5, %v1726_v8 }
 0xacb   :  { %787 = vmin.xlane.f32.xlu1 %v786_v60 }
 0xad2   :  { %v1525_v54 = vpop.eup %1524 }
 0xad3   :  { %v800_v55 = vsel %vm192_vm2, %v1525_v54, 0.0  ;;  %v807_v59 = vmul.f32 %v1525_v54, %v1797_v53 }
 0xb58   :  { %v788_v62 = vpop.xlane.xlu1 %787 }
 0xb59   :  { %vm789_vm12 = vcmp.eq.f32.partialorder %v786_v60, %v788_v62  ;;  %v794_v11 = vcvt.f32.s32 %v788_v62  ;;  %v808_v60 = vsel %vm192_vm2, %v807_v59, 0.0  ;;  %v503_v62 = vmul.f32 1.442695, %v502_v61 }
 0xb5a   :  { %v790_v1 = vsel %vm789_vm12, %v785_v63, inf }
 0xb5b   :  { %791 = vmin.xlane.f32.xlu0 %v790_v1  ;;  %v795_v13 = vshll.u32 %v794_v11, 16  ;;  %1526 = vpow2.f32 %v503_v62 }
 0xb65   :  { %v1527_v7 = vpop.eup %1526 }
 0xb66   :  { %v505_v10 = vsel %vm192_vm2, %v1527_v7, 0.0 }
 0xbe8   :  { %v792_v12 = vpop.xlane.xlu0 %791 }
 0xbe9   :  { %v793_v14 = vcvt.f32.s32 %v792_v12 }
 0xbeb   :  { %v796_v15 = vadd.s32 %v795_v13, %v793_v14  ;;  %v512_v14 = vmul.f32 %v1527_v7, %v1722_v5 }
 0xbed   :  { %vm814_vm14 = vcmp.eq.s32.totalorder %v1655_v26, %v796_v15  ;;  %v1826_v16 = vsel %vm900_vm13, %v796_v15, %v1754_v32  ;;  %v1274_v32 = vld [vmem:[%s1958_s3 + $0x6] ss:$0 sm:$0xff] }
 0xbee   :  { %v1264_v17 = vsel %vm814_vm14, 1.0, %v1548_v4 }
 0xbef   :  { %1423 = vmatmul.mubr.msk.f32.vlgmr.msra.gmra.mrb[8].mxu0 %vm192_vm2, %v1264_v17  ;;  %v513_v17 = vsel %vm192_vm2, %v512_v14, 0.0 }
 0xbf0   :  { %1444 = vmatprep.mubr.msk.f32.mxu0 %vm1547_vm0, %v1548_v4  ;;  %1507 = vmatpush3.bf16.msra.mxu0 %v1506_v24 }
 0xbf1   :  { %1508 = vmatprep.subr.bf16.mxu0 %v1546_v0  ;;  %v1509_v0 = vpack.c.bf16 %v1279_v31, %v1278_v30  ;;  %v1284_v30 = vld [vmem:[%s1960_s4 + $0x38] sm:$0xff] }
 0xbf4   :  { %1510 = vmatpush3.bf16.msra.mxu0 %v1509_v0 }
 0xcc2   :  { %v889_v25 = vpop.f32.mrb[8].mxu0 }
 0xcc3   :  { %v1847_v28 = vadd.f32 %v889_v25, %v1775_v41  ;;  %v1424_v29 = vpop.f32.mrb[9].mxu0 }
 0xcc5   :  { %1434 = vmatmul.mubr.msk.f32.vlgmr.msra.gmra.mrb[8].mxu1 %vm36_vm1, %v1847_v28 }
 0xcc6   :  { %1451 = vmatprep.mubr.msk.f32.mxu1 %vm1547_vm0, %v1548_v4 }
 0xd98   :  { %v985_v33 = vpop.f32.mrb[8].mxu1 }
 0xd99   :  { %v986_v34 = vadd.f32 %v1274_v32, %v985_v33  ;;  %v1435_v35 = vpop.f32.mrb[9].mxu1 }
 0xd9b   :  { %v989_v36 = vmax.f32 %v986_v34, 0.0 }
 0xd9d   :  { %1445 = vmatmul.mubr.msk.f32.vlgmr.msra.gmra.mrb[10].mxu0 %vm36_vm1, %v989_v36 }
 0xe70   :  { %v1068_v38 = vpop.f32.mrb[10].mxu0 }
 0xe71   :  { %v1866_v39 = vadd.f32 %v1280_v37, %v1068_v38  ;;  %v1446_v40 = vpop.f32.mrb[11].mxu0 }
 0xe73   :  { %v1072_v41 = vsel %vm192_vm2, %v1866_v39, -inf }
 0xe74   :  { %1073 = vmax.xlane.f32.xlu1 %v1072_v41 }
 0xf01   :  { %v1874_v46 = vpop.xlane.xlu1 %1073 }
 0xf02   :  { %vm1075_vm15 = vcmp.eq.f32.partialorder %v1866_v39, %v1874_v46  ;;  %v1092_v63 = vsub.f32 %v1866_v39, %v1874_v46 }
 0xf03   :  { %v1076_v47 = vsel %vm1075_vm15, %v1655_v26, 16 }
 0xf04   :  { %v1077_v48 = vsel %vm192_vm2, %v1076_v47, 2147483647  ;;  %v1093_v22 = vmul.f32 1.442695, %v1092_v63 }
 0xf05   :  { %v1079_v49 = vshra.s32 %v1077_v48, 16  ;;  %v1078_v1 = vand.u32 65535, %v1077_v48 }
 0xf06   :  { %1528 = vpow2.f32 %v1093_v22 }
 0xf07   :  { %v1081_v50 = vcvt.s32.f32 %v1079_v49  ;;  %v1080_v3 = vcvt.s32.f32 %v1078_v1 }
 0xf09   :  { %1082 = vmin.xlane.f32.xlu0 %v1081_v50 }
 0xf0d   :  { %217 = vadd.xlane.f32.xlu0 %v216_v52 }
 0xf10   :  { %v1529_v11 = vpop.eup %1528 }
 0xf11   :  { %801 = vadd.xlane.f32.xlu0 %v800_v55  ;;  %v1095_v13 = vsel %vm192_vm2, %v1529_v11, 0.0  ;;  %v1102_v18 = vmul.f32 %v1529_v11, %v1866_v39 }
 0xf13   :  { %v1103_v29 = vsel %vm192_vm2, %v1102_v18, 0.0 }
 0xf15   :  { %225 = vadd.xlane.f32.xlu0 %v224_v58 }
 0xf19   :  { %809 = vadd.xlane.f32.xlu0 %v808_v60 }
 0xf2f   :  { %600 = vrot.lane.b32.xlu0 %v1722_v5, %s1549_s2  ;;  %v1283_v5 = vld [vmem:[%s1960_s4 + $0x30] sm:$0xff]  ;;  %s1551_s4 = smov 48  }
 0xf30   :  { %v1512_v0 = vpack.c.bf16 %v1284_v30, %v1283_v5 }
 0xf32   :  { %1513 = vmatpush3.bf16.msra.mxu1 %v1512_v0 }
 0xf96   :  { %v1083_v2 = vpop.xlane.xlu0 %1082 }
 0xf97   :  { %vm1084_vm0 = vcmp.eq.f32.partialorder %v1081_v50, %v1083_v2  ;;  %v1089_v38 = vcvt.f32.s32 %v1083_v2 }
 0xf98   :  { %v1085_v6 = vsel %vm1084_vm0, %v1080_v3, inf }
 0xf99   :  { %1086 = vmin.xlane.f32.xlu1 %v1085_v6  ;;  %v1090_v41 = vshll.u32 %v1089_v38, 16 }
 0xf9a   :  { %v218_v9 = vpop.xlane.xlu0 %217 }
 0xf9b   :  { %1530 = vlog2.f32 %v218_v9 }
 0xf9c   :  { %1532 = vrcp.f32 %v218_v9 }
 0xf9d   :  { %506 = vadd.xlane.f32.xlu1 %v505_v10 }
 0xf9e   :  { %v802_v12 = vpop.xlane.xlu0 %801 }
 0xf9f   :  { %1534 = vlog2.f32 %v802_v12 }
 0xfa0   :  { %1536 = vrcp.f32 %v802_v12 }
 0xfa1   :  { %1096 = vadd.xlane.f32.xlu1 %v1095_v13 }
 0xfa2   :  { %v226_v15 = vpop.xlane.xlu0 %225 }
 0xfa5   :  { %v1531_v19 = vpop.eup %1530  ;;  %514 = vadd.xlane.f32.xlu1 %v513_v17 }
 0xfa6   :  { %v1533_v20 = vpop.eup %1532  ;;  %v220_v21 = vmul.f32 0.6931472, %v1531_v19  ;;  %v810_v23 = vpop.xlane.xlu0 %809 }
 0xfa7   :  { %v228_v24 = vmul.f32 %v1533_v20, %v226_v15 }
 0xfa8   :  { %v221_v25 = vadd.f32 %v220_v21, %v1657_v27  ;;  %v222_v48 = vsub.f32 0.0, %v220_v21 }
 0xfa9   :  { %v1535_v31 = vpop.eup %1534  ;;  %1104 = vadd.xlane.f32.xlu1 %v1103_v29 }
 0xfaa   :  { %v1537_v32 = vpop.eup %1536  ;;  %v804_v33 = vmul.f32 0.6931472, %v1535_v31  ;;  %v229_v34 = vsub.f32 %v221_v25, %v228_v24  ;;  %v601_v35 = vpop.permute.xlu0 %600  ;;  %v312_v57 = vsel %vm310_vm8, %v222_v48, 0.0 }
 0xfab   :  { %v812_v36 = vmul.f32 %v1537_v32, %v810_v23  ;;  %604 = vst.msk [vmem:[%s1959_s5] sm:$0xff] %vm603_vm3, %v601_v35 }
 0xfac   :  { %v805_v27 = vadd.f32 %v804_v33, %v1801_v56  ;;  %v806_v55 = vsub.f32 0.0, %v804_v33  ;;  %v313_v63 = vsel %vm310_vm8, %v229_v34, 0.0  ;;  %vm1203_vm8 = vcmask 556544  }
 0xfae   :  { %v813_v37 = vsub.f32 %v805_v27, %v812_v36 }
 0xfba   :  { %895 = vrot.lane.b32.xlu1 %v1797_v53, %s1550_s28 }
 0xfbe   :  { %1190 = vrot.lane.b32.xlu1 %v1866_v39, %s1551_s4 }
0x1026   :  { %v1087_v40 = vpop.xlane.xlu1 %1086 }
0x1027   :  { %v1088_v42 = vcvt.f32.s32 %v1087_v40 }
0x1029   :  { %v1091_v43 = vadd.s32 %v1090_v41, %v1088_v42 }
0x102a   :  { %v507_v44 = vpop.xlane.xlu1 %506 }
0x102b   :  { %vm1109_vm6 = vcmp.eq.s32.totalorder %v1655_v26, %v1091_v43  ;;  %1538 = vlog2.f32 %v507_v44  ;;  %v1196_v56 = vsel %vm1195_vm4, %v1091_v43, %v1826_v16 }
0x102c   :  { %v1282_v53 = vsel %vm1109_vm6, 1.0, %v1548_v4  ;;  %1540 = vrcp.f32 %v507_v44  ;;  %1212 = vst.msk [vmem:[%s1961_s6] sm:$0xff] %vm1211_vm5, %v1196_v56 }
0x102d   :  { %1452 = vmatmul.mubr.msk.f32.vlgmr.msra.gmra.mrb[10].mxu1 %vm192_vm2, %v1282_v53  ;;  %vm1193_vm2 = vcmask 523648  }
0x102e   :  { %v1097_v39 = vpop.xlane.xlu1 %1096 }
0x102f   :  { %1542 = vlog2.f32 %v1097_v39 }
0x1030   :  { %1544 = vrcp.f32 %v1097_v39 }
0x1032   :  { %v515_v45 = vpop.xlane.xlu1 %514 }
0x1035   :  { %v1539_v47 = vpop.eup %1538 }
0x1036   :  { %v1541_v49 = vpop.eup %1540  ;;  %v509_v50 = vmul.f32 0.6931472, %v1539_v47  ;;  %v1105_v51 = vpop.xlane.xlu1 %1104 }
0x1037   :  { %v517_v4 = vmul.f32 %v1541_v49, %v515_v45 }
0x1038   :  { %v511_v52 = vsub.f32 0.0, %v509_v50  ;;  %v510_v16 = vadd.f32 %v509_v50, %v1726_v8 }
0x1039   :  { %v1543_v54 = vpop.eup %1542 }
0x103a   :  { %v1545_v58 = vpop.eup %1544  ;;  %v1099_v59 = vmul.f32 0.6931472, %v1543_v54  ;;  %v518_v60 = vsub.f32 %v510_v16, %v517_v4  ;;  %v896_v61 = vpop.permute.xlu1 %895  ;;  %v607_v62 = vsel %vm605_vm9, %v511_v52, %v312_v57 }
0x103b   :  { %899 = vst.msk [vmem:[%s1959_s5] sm:$0xff] %vm898_vm7, %v896_v61  ;;  %v902_v8 = vsel %vm900_vm13, %v806_v55, %v607_v62  ;;  %v1107_v1 = vmul.f32 %v1545_v58, %v1105_v51 }
0x103c   :  { %v1100_v22 = vadd.f32 %v1099_v59, %v1874_v46  ;;  %v1101_v2 = vsub.f32 0.0, %v1099_v59  ;;  %v608_v3 = vsel %vm605_vm9, %v518_v60, %v313_v63  ;;  %vm1209_vm9 = vcmask 589344  }
0x103d   :  { %v903_v6 = vsel %vm900_vm13, %v813_v37, %v608_v3 }
0x103e   :  { %v1108_v7 = vsub.f32 %v1100_v22, %v1107_v1  ;;  %v1191_v9 = vpop.permute.xlu1 %1190  ;;  %v1197_v10 = vsel %vm1195_vm4, %v1101_v2, %v902_v8 }
0x103f   :  { %1194 = vst.msk [vmem:[%s1959_s5] sm:$0xff] %vm1193_vm2, %v1191_v9  ;;  %1200 = vrot.lane.b32.xlu1 %v1197_v10, %s1552_s11 }
0x1040   :  { %v1198_v46 = vsel %vm1195_vm4, %v1108_v7, %v903_v6 }
0x1041   :  { %1206 = vrot.lane.b32.xlu0 %v1198_v46, %s1553_s12 }
0x10b1   :  { %v1201_v11 = vpop.permute.xlu1 %1200 }
0x10b2   :  { %1204 = vst.msk [vmem:[%s1959_s5] sm:$0xff] %vm1203_vm8, %v1201_v11 }
0x10b3   :  { %v1207_v12 = vpop.permute.xlu0 %1206 }
0x10b4   :  { %1210 = vst.msk [vmem:[%s1959_s5] sm:$0xff] %vm1209_vm9, %v1207_v12 }
0x1100   :  { %v1184_v13 = vpop.f32.mrb[10].mxu1 }
0x1101   :  { %v1188_v14 = vadd.f32 %v1184_v13, %v1847_v28  ;;  %v1453_v15 = vpop.f32.mrb[11].mxu1 }
0x1103   :  { %1213 = vst.msk [vmem:[%s1962_s7] sm:$0xff] %vm36_vm1, %v1188_v14 }

</bundles_post_ra>
